<compile_context>
chip_gen: v7x
topology: tpu7x:2x2x1
jax: 0.10.0
libtpu: 0.0.40
codegen_flags: <defaults>
</compile_context>

<pallas_src>
import jax
import jax.numpy as jnp
from jax.experimental import pallas as pl
from jax.experimental.pallas import tpu as pltpu


def _round_up(a, b):
    return (a + b - 1) // b * b


def _vmem_physical_bytes():
    # Conservative fallback = v7x per-TC VMEM (64 MiB).
    try:
        info = pltpu.get_tpu_info()
        return int(getattr(info, "vmem_capacity_bytes", 64 * 1024 * 1024))
    except Exception:
        return 64 * 1024 * 1024


def _make_cached_kernel(nv):
    """Two passes over nv vocab tiles: pass 1 computes logits once (MXU), accumulates the online
    max / sum-exp and caches the f32 logits in VMEM; pass 2 normalizes from the cache."""

    def kernel(x_ref, w_ref, b_ref, o_ref, m_sc, l_sc, logits_sc):
        k = pl.program_id(1)

        @pl.when(k == 0)
        def _init():
            m_sc[...] = jnp.full_like(m_sc, -jnp.inf)
            l_sc[...] = jnp.zeros_like(l_sc)

        @pl.when(k < nv)
        def _stats():
            # x @ W^T on the MXU (weight kept in PyTorch (V, D) layout), f32 accumulation.
            logits = jax.lax.dot_general(
                x_ref[...], w_ref[...],
                dimension_numbers=(((1,), (1,)), ((), ())),
                preferred_element_type=jnp.float32,
            ) + b_ref[...]
            m_prev = m_sc[...]
            m_new = jnp.maximum(m_prev, jnp.max(logits, axis=-1, keepdims=True))
            l_sc[...] = l_sc[...] * jnp.exp(m_prev - m_new) + jnp.sum(
                jnp.exp(logits - m_new), axis=-1, keepdims=True)
            m_sc[...] = m_new
            logits_sc[k] = logits            # cache -> no matmul recompute in pass 2

        @pl.when(k >= nv)
        def _write():
            lse = m_sc[...] + jnp.log(l_sc[...])
            o_ref[...] = (logits_sc[k - nv] - lse).astype(o_ref.dtype)

    return kernel


def _make_recompute_kernel(nv):
    """Fallback for very large vocab (logits cache would not fit VMEM): pass 2 recomputes logits.
    TODO(synk): a two-pallas_call split (kernel 1 writes raw logits + per-row m/l partials,
    kernel 2 normalizes) would avoid this recompute entirely for huge vocabularies."""

    def kernel(x_ref, w_ref, b_ref, o_ref, m_sc, l_sc):
        k = pl.program_id(1)
        logits = jax.lax.dot_general(
            x_ref[...], w_ref[...],
            dimension_numbers=(((1,), (1,)), ((), ())),
            preferred_element_type=jnp.float32,
        ) + b_ref[...]

        @pl.when(k == 0)
        def _init():
            m_sc[...] = jnp.full_like(m_sc, -jnp.inf)
            l_sc[...] = jnp.zeros_like(l_sc)

        @pl.when(k < nv)
        def _stats():
            m_prev = m_sc[...]
            m_new = jnp.maximum(m_prev, jnp.max(logits, axis=-1, keepdims=True))
            l_sc[...] = l_sc[...] * jnp.exp(m_prev - m_new) + jnp.sum(
                jnp.exp(logits - m_new), axis=-1, keepdims=True)
            m_sc[...] = m_new

        @pl.when(k >= nv)
        def _write():
            lse = m_sc[...] + jnp.log(l_sc[...])
            o_ref[...] = (logits - lse).astype(o_ref.dtype)

    return kernel


def make_projection_layer(weight, bias, *, tm=256, tv_cap=2048, out_dtype=jnp.float32,
                          cache_budget_bytes=None):
    """One-time setup (padding + bf16 cast hoisted out of the hot path). Returns jitted apply(x):
    apply(x) == log_softmax(x @ weight.T + bias, axis=-1) with x: (B, S, D)."""
    V, D = weight.shape
    assert bias.shape == (V,)

    vmem_phys = _vmem_physical_bytes()

    # --- vocab tile selection: direct pick, padded up to a multiple of tv -------------------
    # Keep one (tv, D) bf16 weight buffer <= ~8 MiB so the double-buffered stream fits v7x.
    w_buf_budget = 8 * 1024 * 1024
    v128 = _round_up(V, 128)
    if v128 <= 256:
        tv = v128                                   # tiny vocab: one lane-dense tile
    else:
        tv = min(tv_cap, max(256, (w_buf_budget // (2 * D)) // 256 * 256))
        tv = max(256, (tv // 256) * 256)            # 256-multiple for the 2x256^2 MXU
    Vp = _round_up(V, tv)
    nv = Vp // tv

    # --- one-time parameter prep (not per forward call) -------------------------------------
    w = weight.astype(jnp.bfloat16)                 # keep (V, D) PyTorch layout; no transpose
    b = bias.astype(jnp.float32)
    if Vp != V:
        w = jnp.pad(w, ((0, Vp - V), (0, 0)))
        # Large finite negative bias: padded vocab columns never win the max / add to the lse.
        b = jnp.pad(b, (0, Vp - V), constant_values=-1e30)
    b = jax.device_put(b.reshape(1, Vp))
    w = jax.device_put(w)

    cache_budget = cache_budget_bytes
    if cache_budget is None:
        cache_budget = max(8 * 1024 * 1024, int(vmem_phys * 0.25))

    out_bytes = jnp.dtype(out_dtype).itemsize

    @jax.jit
    def apply(x):
        B, S, D2 = x.shape
        assert D2 == D
        M = B * S

        tm_eff = min(tm, _round_up(M, 16))          # bf16 sublane packing = 16
        Mp = _round_up(M, tm_eff)
        nm = Mp // tm_eff

        x2 = x.reshape(M, D).astype(jnp.bfloat16)
        if Mp != M:
            x2 = jnp.pad(x2, ((0, Mp - M), (0, 0)))

        cache_bytes = nv * tm_eff * tv * 4
        cached = cache_bytes <= cache_budget

        # Double-buffered streaming footprint + scratch, with headroom, clamped to physical VMEM.
        stream_bytes = 2 * (tm_eff * D * 2 + tv * D * 2 + tv * 4 + tm_eff * tv * out_bytes)
        scratch_bytes = 2 * tm_eff * 4 + (cache_bytes if cached else 0)
        vmem_limit = int(min(int(vmem_phys * 7 // 8),
                             max(32 * 1024 * 1024, int((stream_bytes + scratch_bytes) * 1.3))))

        grid = (nm, 2 * nv)                          # axis 1: [0,nv) stats, [nv,2nv) write

        if cached:
            kernel = _make_cached_kernel(nv)
            # Weight/bias only needed in pass 1 -> pin the block index in pass 2 (no re-DMA).
            w_idx = lambda i, k: (jnp.minimum(k, nv - 1), 0)
            b_idx = lambda i, k: (0, jnp.minimum(k, nv - 1))
            o_idx = lambda i, k: (i, jnp.maximum(k - nv, 0))
            scratch = [pltpu.VMEM((tm_eff, 1), jnp.float32),     # running max
                       pltpu.VMEM((tm_eff, 1), jnp.float32),     # running sum-exp
                       pltpu.VMEM((nv, tm_eff, tv), jnp.float32)]  # logits cache
        else:
            kernel = _make_recompute_kernel(nv)
            # Serpentine vocab order in pass 2: resident weight tile is re-used at the boundary.
            w_idx = lambda i, k: (jnp.minimum(k, 2 * nv - 1 - k), 0)
            b_idx = lambda i, k: (0, jnp.minimum(k, 2 * nv - 1 - k))
            o_idx = lambda i, k: (i, jnp.minimum(nv - 1, 2 * nv - 1 - k))
            scratch = [pltpu.VMEM((tm_eff, 1), jnp.float32),
                       pltpu.VMEM((tm_eff, 1), jnp.float32)]

        out = pl.pallas_call(
            kernel,
            out_shape=jax.ShapeDtypeStruct((Mp, Vp), out_dtype),
            grid_spec=pltpu.PrefetchScalarGridSpec(
                num_scalar_prefetch=0,
                grid=grid,
                in_specs=[
                    pl.BlockSpec((tm_eff, D), lambda i, k: (i, 0)),   # activation row tile (bf16)
                    pl.BlockSpec((tv, D), w_idx),                     # weight tile, (V, D) layout
                    pl.BlockSpec((1, tv), b_idx),                     # bias tile (f32)
                ],
                out_specs=pl.BlockSpec((tm_eff, tv), o_idx),          # lane-dense, written pass 2
                scratch_shapes=scratch,
            ),
            compiler_params=pltpu.CompilerParams(
                dimension_semantics=("parallel", "arbitrary"),
                vmem_limit_bytes=vmem_limit,
            ),
        )(x2, w, b)

        return out[:M, :V].reshape(B, S, V)

    return apply


def _reference(x, weight, bias):
    # Match the kernel's bf16 MXU inputs (bf16 x bf16 products are exact in f32).
    xb = x.astype(jnp.bfloat16).astype(jnp.float32)
    wb = weight.astype(jnp.bfloat16).astype(jnp.float32)
    logits = jnp.einsum("bsd,vd->bsv", xb, wb,
                        precision=jax.lax.Precision.HIGHEST) + bias
    return jax.nn.log_softmax(logits, axis=-1)


if __name__ == "__main__":
    # Small shapes implied by the module: (batch, seq, d_model) -> (batch, seq, vocab).
    # tm=16 / tv_cap=256 here are just to exercise multiple row tiles and vocab tiles at this
    # tiny size; production defaults are tm=256, tv_cap=2048.
    B, S, D, V = 2, 16, 32, 512

    key = jax.random.PRNGKey(0)
    kx, kw, kb = jax.random.split(key, 3)

    x = jax.random.normal(kx, (B, S, D), dtype=jnp.float32)
    bound = 1.0 / (D ** 0.5)   # nn.Linear-style uniform(-1/sqrt(D), 1/sqrt(D)) init
    weight = jax.random.uniform(kw, (V, D), minval=-bound, maxval=bound, dtype=jnp.float32)
    bias = jax.random.uniform(kb, (V,), minval=-bound, maxval=bound, dtype=jnp.float32)

    proj = make_projection_layer(weight, bias, tm=16, tv_cap=256)
    out = jax.block_until_ready(proj(x))

    ref = _reference(x, weight, bias)
    assert out.shape == (B, S, V)
    assert jnp.allclose(out, ref, atol=1e-4, rtol=1e-4), "mismatch vs reference"

    print("KERNEL_OK")
</pallas_src>

<mosaic_0001>
module attributes {stable_mosaic.version = 11 : i64} {
  func.func @kernel(%arg0: i32, %arg1: i32, %arg2: memref<16x32xbf16, #tpu.memory_space<vmem>>, %arg3: memref<256x32xbf16, #tpu.memory_space<vmem>>, %arg4: memref<1x256xf32, #tpu.memory_space<vmem>>, %arg5: memref<16x256xf32, #tpu.memory_space<vmem>>, %arg6: memref<16x1xf32, #tpu.memory_space<vmem>>, %arg7: memref<16x1xf32, #tpu.memory_space<vmem>>, %arg8: memref<2x16x256xf32, #tpu.memory_space<vmem>>) attributes {dimension_semantics = [#tpu.dimension_semantics<parallel>, #tpu.dimension_semantics<arbitrary>], iteration_bounds = array<i64: 2, 4>, scalar_prefetch = 0 : i64, scratch_operands = 3 : i64, tpu.core_type = #tpu.core_type<tc>, window_params = [{transform_indices = @transform_0, window_bounds = array<i64: 16, 32>}, {transform_indices = @transform_1, window_bounds = array<i64: 256, 32>}, {transform_indices = @transform_2, window_bounds = array<i64: 1, 256>}, {transform_indices = @transform_3, window_bounds = array<i64: 16, 256>}]} {
    %c0_i32 = arith.constant 0 : i32
    %0 = arith.cmpi eq, %arg1, %c0_i32 : i32
    %1 = arith.extui %0 : i1 to i32
    %c0_i32_0 = arith.constant 0 : i32
    %2 = arith.cmpi ne, %1, %c0_i32_0 : i32
    scf.if %2 {
      %cst = arith.constant 0xFF800000 : f32
      %9 = vector.broadcast %cst : f32 to vector<16x1xf32>
      %c0 = arith.constant 0 : index
      %c0_4 = arith.constant 0 : index
      %10 = vector.load %arg6[%c0, %c0_4] : memref<16x1xf32, #tpu.memory_space<vmem>>, vector<16x1xf32>
      tpu.vector_store %arg6[%c0, %c0_4], %9 {strides = array<i32>} : memref<16x1xf32, #tpu.memory_space<vmem>>, vector<16x1xf32>,
      %cst_5 = arith.constant 0.000000e+00 : f32
      %11 = vector.broadcast %cst_5 : f32 to vector<16x1xf32>
      %c0_6 = arith.constant 0 : index
      %c0_7 = arith.constant 0 : index
      %12 = vector.load %arg7[%c0_6, %c0_7] : memref<16x1xf32, #tpu.memory_space<vmem>>, vector<16x1xf32>
      tpu.vector_store %arg7[%c0_6, %c0_7], %11 {strides = array<i32>} : memref<16x1xf32, #tpu.memory_space<vmem>>, vector<16x1xf32>,
    } else {
    }
    %c2_i32 = arith.constant 2 : i32
    %3 = arith.cmpi slt, %arg1, %c2_i32 : i32
    %4 = arith.extui %3 : i1 to i32
    %c0_i32_1 = arith.constant 0 : i32
    %5 = arith.cmpi ne, %4, %c0_i32_1 : i32
    scf.if %5 {
      %c0 = arith.constant 0 : index
      %c0_4 = arith.constant 0 : index
      %9 = vector.load %arg2[%c0, %c0_4] : memref<16x32xbf16, #tpu.memory_space<vmem>>, vector<16x32xbf16>
      %c0_5 = arith.constant 0 : index
      %c0_6 = arith.constant 0 : index
      %10 = vector.load %arg3[%c0_5, %c0_6] : memref<256x32xbf16, #tpu.memory_space<vmem>>, vector<256x32xbf16>
      %cst = arith.constant dense<0.000000e+00> : vector<16x256xf32>
      %11 = tpu.matmul %9, %10, %cst {dimension_numbers = #tpu.dot_dimension_numbers<[1], [1], [0], [0], [0, 0, 1, 0], [], []>} : vector<16x32xbf16>, vector<256x32xbf16>, vector<16x256xf32> -> vector<16x256xf32>
      %c0_7 = arith.constant 0 : index
      %c0_8 = arith.constant 0 : index
      %12 = vector.load %arg4[%c0_7, %c0_8] : memref<1x256xf32, #tpu.memory_space<vmem>>, vector<1x256xf32>
      %13 = vector.broadcast %12 : vector<1x256xf32> to vector<16x256xf32>
      %14 = arith.addf %11, %13 : vector<16x256xf32>
      %c0_9 = arith.constant 0 : index
      %c0_10 = arith.constant 0 : index
      %15 = vector.load %arg6[%c0_9, %c0_10] : memref<16x1xf32, #tpu.memory_space<vmem>>, vector<16x1xf32>
      %cst_11 = arith.constant dense<0xFF800000> : vector<16xf32>
      %16 = vector.multi_reduction <maximumf>, %14, %cst_11 [1] : vector<16x256xf32> to vector<16xf32>
      %17 = vector.shape_cast %16 : vector<16xf32> to vector<16x1xf32>
      %18 = arith.maximumf %15, %17 : vector<16x1xf32>
      %c0_12 = arith.constant 0 : index
      %c0_13 = arith.constant 0 : index
      %19 = vector.load %arg7[%c0_12, %c0_13] : memref<16x1xf32, #tpu.memory_space<vmem>>, vector<16x1xf32>
      %20 = arith.subf %15, %18 : vector<16x1xf32>
      %21 = math.exp %20 : vector<16x1xf32>
      %22 = arith.mulf %19, %21 : vector<16x1xf32>
      %23 = vector.broadcast %18 : vector<16x1xf32> to vector<16x256xf32>
      %24 = arith.subf %14, %23 : vector<16x256xf32>
      %25 = math.exp %24 : vector<16x256xf32>
      %cst_14 = arith.constant dense<0.000000e+00> : vector<16xf32>
      %26 = vector.multi_reduction <add>, %25, %cst_14 [1] : vector<16x256xf32> to vector<16xf32>
      %27 = vector.shape_cast %26 : vector<16xf32> to vector<16x1xf32>
      %28 = arith.addf %22, %27 : vector<16x1xf32>
      %c0_15 = arith.constant 0 : index
      %c0_16 = arith.constant 0 : index
      %29 = vector.load %arg7[%c0_15, %c0_16] : memref<16x1xf32, #tpu.memory_space<vmem>>, vector<16x1xf32>
      tpu.vector_store %arg7[%c0_15, %c0_16], %28 {strides = array<i32>} : memref<16x1xf32, #tpu.memory_space<vmem>>, vector<16x1xf32>,
      %c0_17 = arith.constant 0 : index
      %c0_18 = arith.constant 0 : index
      %30 = vector.load %arg6[%c0_17, %c0_18] : memref<16x1xf32, #tpu.memory_space<vmem>>, vector<16x1xf32>
      tpu.vector_store %arg6[%c0_17, %c0_18], %18 {strides = array<i32>} : memref<16x1xf32, #tpu.memory_space<vmem>>, vector<16x1xf32>,
      %31 = arith.index_cast %arg1 : i32 to index
      %c0_19 = arith.constant 0 : index
      %c0_20 = arith.constant 0 : index
      %32 = vector.load %arg8[%31, %c0_19, %c0_20] : memref<2x16x256xf32, #tpu.memory_space<vmem>>, vector<1x16x256xf32>
      %33 = vector.shape_cast %32 : vector<1x16x256xf32> to vector<16x256xf32>
      %34 = vector.shape_cast %14 : vector<16x256xf32> to vector<1x16x256xf32>
      tpu.vector_store %arg8[%31, %c0_19, %c0_20], %34 {strides = array<i32>} : memref<2x16x256xf32, #tpu.memory_space<vmem>>, vector<1x16x256xf32>,
    } else {
    }
    %c2_i32_2 = arith.constant 2 : i32
    %6 = arith.cmpi sge, %arg1, %c2_i32_2 : i32
    %7 = arith.extui %6 : i1 to i32
    %c0_i32_3 = arith.constant 0 : i32
    %8 = arith.cmpi ne, %7, %c0_i32_3 : i32
    scf.if %8 {
      %c0 = arith.constant 0 : index
      %c0_4 = arith.constant 0 : index
      %9 = vector.load %arg6[%c0, %c0_4] : memref<16x1xf32, #tpu.memory_space<vmem>>, vector<16x1xf32>
      %c0_5 = arith.constant 0 : index
      %c0_6 = arith.constant 0 : index
      %10 = vector.load %arg7[%c0_5, %c0_6] : memref<16x1xf32, #tpu.memory_space<vmem>>, vector<16x1xf32>
      %11 = math.log %10 : vector<16x1xf32>
      %12 = arith.addf %9, %11 : vector<16x1xf32>
      %c2_i32_7 = arith.constant 2 : i32
      %13 = arith.subi %arg1, %c2_i32_7 : i32
      %14 = arith.index_cast %13 : i32 to index
      %c0_8 = arith.constant 0 : index
      %c0_9 = arith.constant 0 : index
      %15 = vector.load %arg8[%14, %c0_8, %c0_9] : memref<2x16x256xf32, #tpu.memory_space<vmem>>, vector<1x16x256xf32>
      %16 = vector.shape_cast %15 : vector<1x16x256xf32> to vector<16x256xf32>
      %17 = vector.broadcast %12 : vector<16x1xf32> to vector<16x256xf32>
      %18 = arith.subf %16, %17 : vector<16x256xf32>
      %c0_10 = arith.constant 0 : index
      %c0_11 = arith.constant 0 : index
      %19 = vector.load %arg5[%c0_10, %c0_11] : memref<16x256xf32, #tpu.memory_space<vmem>>, vector<16x256xf32>
      tpu.vector_store %arg5[%c0_10, %c0_11], %18 {strides = array<i32>} : memref<16x256xf32, #tpu.memory_space<vmem>>, vector<16x256xf32>,
    } else {
    }
    return
  }
  func.func @transform_0(%arg0: i32, %arg1: i32) -> (i32, i32) {
    %c0_i32 = arith.constant 0 : i32
    %c0_i32_0 = arith.constant 0 : i32
    return %arg0, %c0_i32 : i32, i32
  }
  func.func @transform_1(%arg0: i32, %arg1: i32) -> (i32, i32) {
    %c1_i32 = arith.constant 1 : i32
    %0 = arith.minsi %arg1, %c1_i32 : i32
    %c0_i32 = arith.constant 0 : i32
    %c0_i32_0 = arith.constant 0 : i32
    return %0, %c0_i32 : i32, i32
  }
  func.func @transform_2(%arg0: i32, %arg1: i32) -> (i32, i32) {
    %c1_i32 = arith.constant 1 : i32
    %0 = arith.minsi %arg1, %c1_i32 : i32
    %c0_i32 = arith.constant 0 : i32
    %c0_i32_0 = arith.constant 0 : i32
    return %c0_i32, %0 : i32, i32
  }
  func.func @transform_3(%arg0: i32, %arg1: i32) -> (i32, i32) {
    %c2_i32 = arith.constant 2 : i32
    %0 = arith.subi %arg1, %c2_i32 : i32
    %c0_i32 = arith.constant 0 : i32
    %1 = arith.maxsi %0, %c0_i32 : i32
    %c0_i32_0 = arith.constant 0 : i32
    return %arg0, %1 : i32, i32
  }
}

</mosaic_0001>

<bundles_post_ra>
// kernel: apply.1
= control target key start
LH: loop header
LB: loop body
LE: loop exit
PB: predicated region body
PF: predicated region fallthrough
CT: control target
= control target key end

     0   :  { %8 = vsyncpa [#allocation6], 0  ;;  %s1475_s0 = inlined_call_operand.vmem [shape: bf16[32,32], index: 0, kind: input, shape index: {}]   ;;  %s1476_s1 = inlined_call_operand.hbm [shape: bf16[512,32], index: 1, kind: input, shape index: {}]   ;;  %s1477_s2 = inlined_call_operand.vmem [shape: f32[1,512], index: 2, kind: input, shape index: {}]   ;;  %s1478_s3 = inlined_call_operand.hbm [shape: f32[32,512], index: 3, kind: output, shape index: {}]  }
   0x1   :  { %10 = vsyncpa [#allocation6 + $0x1], 0 }
   0x2   :  { %11 = vsyncpa [#allocation7], 0 }
   0x3   :  { %13 = vsyncpa [#allocation7 + $0x1], 0  ;;  %s1163_s12 = smov 0   ;;  %s1165_s13 = smov 0  }
   0x4   :  { %s1167_s14 = smov 0   ;;  %s1169_s15 = smov 0  }
   0x5   :  { %s1171_s16 = smov 0   ;;  %s1173_s17 = smov 0  }
   0x6   :  { %s1175_s18 = smov 0   ;;  %s1177_s19 = smov 0  }
   0x7   :  { %s1179_s20 = smov 0   ;;  %s1181_s21 = smov 0  }
   0x8   :  { %s1183_s22 = smov 0  }
   0x9 LB: > { %1483 = sst [smem:[#allocation11_spill]] %s1126_s21  ;;  %s752_s23 = sadd.s32 4294967295, %s1130_s22   ;;  %s1130_s22 = sphi %s1183_s22, %s19_s22   ;;  %s1126_s21 = sphi %s1181_s21, %s1495_s21   ;;  %s1122_s20 = sphi %s1179_s20, %s1503_s20   ;;  %s1118_s19 = sphi %s1177_s19, %s1493_s19   ;;  %s1114_s18 = sphi %s1175_s18, %s1502_s18   ;;  %s1110_s17 = sphi %s1173_s17, %s1501_s17   ;;  %s1106_s16 = sphi %s1171_s16, %s1500_s16   ;;  %s1102_s15 = sphi %s1169_s15, %s1499_s15   ;;  %s1098_s14 = sphi %s1167_s14, %s1498_s14   ;;  %s1094_s13 = sphi %s1165_s13, %s1497_s13   ;;  %s1090_s12 = sphi %s1163_s12, %s1496_s12  }
   0xa   : > { %s753_s24 = sadd.s32 4294967294, %s1130_s22   ;;  %s28_s25 = sadd.s32 1, %s1122_s20 }
   0xb   : > { %s31_s26 = sadd.s32 1, %s1126_s21  ;;  %p29_p0 = scmp.ge.s32.totalorder %s28_s25, 4 }
   0xc   : > { %p61_p1 = scmp.lt.s32.totalorder %s1122_s20, 1  ;;  %s68_s27 = sadd.s32 1, %s1110_s17 }
   0xd   : > { %p75_p2 = scmp.ne.s32.totalorder %s1110_s17, %s1106_s16  ;;  %s1505_s25 = smov (%p29_p0, %s28_s25), 0 }
   0xe   : > { %1484 = sst [smem:[#allocation12_spill]] %s1505_s25  ;;  %s1507_s26 = smov (!%p29_p0, %s31_s26), %s1126_s21 }
   0xf   : > { %s1230_s28 = scalar_select %p61_p1, %s1122_s20, 1 }
  0x10   : > { %p33_p3 = scmp.ge.s32.totalorder %s1507_s26, 2  ;;  %p63_p4 = scmp.lt.s32.totalorder %s1505_s25, 1 }
  0x11   : > { %p76_p5 = scmp.eq.s32.totalorder %s1130_s22, 0  ;;  %p81_p6 = scmp.ne.s32.totalorder %s1106_s16, %s1102_s15 }
  0x12   : > { %s1509_s26 = smov (%p33_p3, %s1507_s26), 0  ;;  %p82_p8 = scmp.eq.s32.totalorder %s752_s23, 0 }
  0x13   : > { %1485 = sst [smem:[#allocation13_spill]] %s1509_s26  ;;  %p1239_p7 = por %p76_p5, %p75_p2 }
  0x14   : > { %s64_s29 = scalar_select %p63_p4, %s1505_s25, 1 }
  0x15   : > { %s754_s5 = sadd.s32 4294967294, %s1122_s20  ;;  %p1247_p10 = por %p82_p8, %p81_p6 }
  0x16   : > { %s65_s4 = ssub.s32 %s1230_s28, %s64_s29  ;;  %p122_p11 = scmp.gt.s32.totalorder %s754_s5, 0 }
  0x17   : > { %p66_p9 = scmp.eq.s32.totalorder %s65_s4, 0  ;;  %s755_s7 = sadd.s32 4294967294, %s1505_s25 }
  0x18   : > { %s1511_s5 = smov (!%p122_p11, %s754_s5), 0  ;;  %p125_p12 = scmp.gt.s32.totalorder %s755_s7, 0 }
  0x19   : > { %s1253_s8 = scalar_select %p66_p9, %s1110_s17, %s68_s27  }
  0x1a   : > { %s127_s9 = ssub.s32 %s1126_s21, %s1509_s26  ;;  %s132_s10 = sadd.s32 1, %s1098_s14 }
  0x1b   : > { %p142_p13 = scmp.ne.s32.totalorder %s1098_s14, %s1094_s13  ;;  %s1513_s7 = smov (!%p125_p12, %s755_s7), 0 }
  0x1c   : > { %p143_p0 = scmp.eq.s32.totalorder %s752_s23, 7  ;;  %p148_p1 = scmp.ne.s32.totalorder %s1094_s13, %s1090_s12 }
  0x1d   : > { %s128_s11 = ssub.s32 %s1511_s5, %s1513_s7  ;;  %p149_p2 = scmp.eq.s32.totalorder %s753_s24, 7 }
  0x1e   : > { %s129_s15 = sor.u32 %s128_s11, %s127_s9  ;;  %p1266_p3 = por %p143_p0, %p142_p13 }
  0x1f   : > { %p130_p4 = scmp.eq.s32.totalorder %s129_s15, 0  ;;  %p1270_p5 = por %p149_p2, %p148_p1 }
  0x20   : > { %s1488_s27 = scalar_select %p1266_p3, 1, 0 }
  0x21   : > { %s1489_s29 = scalar_select %p1270_p5, 1, 0 }
  0x22   : > { %p843_p6 = scmp.lt.s32.totalorder %s1130_s22, 8  ;;  %s178_s26 = sand.u32 1, %s1110_s17  }
  0x23   : > { %s1276_s4 = scalar_select %p130_p4, %s1098_s14, %s132_s10  }
  0x24   : > { %s801_s23 = sshll.u32 %s1230_s28, 11  ;;  %s758_s25 = sshll.u32 %s178_s26, 7 }
  0x25   : > { %s1283_s24 = scalar_lea.hbm %s1476_s1, %s801_s23  ;;  %s182_s7 = scalar_lea.vmem [#allocation5], %s758_s25 }
  0x26   : > { %s191_s9 = sshll.u32 %s182_s7, 4  ;;  %p1287_p8 = pnand %p843_p6, %p1239_p7  ;;  %s1291_s9 = int_to_ptr.vmem [resolvable:$true] %s191_s9 }
  0x27   : > { %s1293_s28 = scalar_lea.sflag [#allocation6], %s178_s26  ;;  %s978_s21 = scalar_lea.hbm %s1283_s24, 2048 }
  0x28   : > { %p979_p9 = scmp.ne.s32.totalorder %s1283_s24, %s978_s21  ;;  %p980_p11 = pneg %p1287_p8 }
  0x29   : > { %s983_s10 = scalar_lea.hbm %s1476_s1, 4096  ;;  %p984_p7 = scmp.lt.u32.totalorder %s1283_s24, %s1476_s1 }
  0x2a   : > { %p981_p12 = pnand %p980_p11, %p979_p9  ;;  %p985_p0 = scmp.lt.u32.totalorder %s983_s10, %s978_s21 }
  0x2b   : > { %p987_p2 = scmp.lt.u32.totalorder %s978_s21, %s1283_s24 }
  0x2c   : > { %p982_p13 = pneg %p981_p12  ;;  %p986_p1 = por %p985_p0, %p984_p7 }
  0x2e   : > { %p988_p4 = por %p987_p2, %p986_p1 }
  0x30   : > { %p989_p6 = pnand %p988_p4, %p982_p13 }
  0x32   : > { %992 = shalt.err (!%p989_p6)
}
  0x33   : > { %s993_s26 = scalar_lea.vmem %s1291_s9, 2048  ;;  %s1132_s5 = smov [#allocation5]  }
  0x34   : > { %p994_p9 = scmp.ne.s32.totalorder %s1291_s9, %s993_s26  ;;  %s998_s7 = sshll.u32 %s1132_s5, 4  ;;  %s999_s7 = int_to_ptr.vmem [resolvable:$false] %s998_s7 }
  0x35   : > { %s1000_s25 = scalar_lea.vmem %s999_s7, 4096  ;;  %p1001_p3 = scmp.lt.s32.totalorder %s1291_s9, %s999_s7 }
  0x36   : > { %p996_p12 = pnand %p994_p9, %p980_p11  ;;  %p1002_p7 = scmp.lt.s32.totalorder %s1000_s25, %s993_s26 }
  0x38   : > { %p997_p5 = pneg %p996_p12  ;;  %p1003_p0 = por %p1002_p7, %p1001_p3 }
  0x3a   : > { %p1004_p1 = pnand %p1003_p0, %p997_p5 }
  0x3c   : > { %1007 = shalt.err (!%p1004_p1)
}
  0x3d   : > { %s1133_s21 = smov 64   ;;  %s1134_s30 = smov 4  }
  0x3e   : > { %838 = dma.hbm_to_vmem [thread:$0]  (!%p1287_p8), %s1283_s24, 2048, %s1291_s9, %s1293_s28, %s1133_s21, %s1133_s21, %s1134_s30  }
  0x3f   : > { %p761_p11 = scmp.ge.s32.totalorder %s1130_s22, 1  ;;  %p211_p13 = scmp.lt.s32.totalorder %s1130_s22, 9 }
  0x41   : > { %p212_p2 = pnand %p761_p11, %p211_p13 }
  0x42   : > { %s217_s10 = sand.u32 (!%p212_p2), 1, %s1106_s16  }
  0x43   : > { %215 = sbr.rel (%p212_p2) target bundleno = 993 (0x3e1), region = 32  ;;  %s762_s15 = sshll.u32 (!%p212_p2), %s217_s10, 7 }
  0x44   : > { %s218_s23 = scalar_lea.sflag (!%p212_p2), [#allocation6], %s217_s10  ;;  %s1324_s26 = scalar_lea.vmem (!%p212_p2), [#allocation5], %s762_s15 }
  0x4a   : > { %1081 = dma.done.wait (%p1247_p10), %s218_s23, 2048  }
  0x4b   : > { %1083 = vsyncadd (%p1247_p10), %s218_s23, 4294965248  ;;  %s252_s24 = sand.u32 1, %s1094_s13   ;;  %s764_s9 = sshll.u32 %s1118_s19, 1 }
  0x4c   : > { %s763_s11 = sshll.u32 %s252_s24, 5  ;;  %p256_p3 = scmp.lt.s32.totalorder %s764_s9, 3 }
  0x4d   : > { %p264_p5 = scmp.lt.s32.totalorder %s1114_s18, 1  ;;  %s1347_s23 = scalar_lea.vmem [#allocation8], %s763_s11 }
  0x4e   : > { %s1515_s9 = smov (!%p256_p3, %s764_s9), 3  ;;  %p767_p8 = scmp.ne.s32.totalorder %s1114_s18, 0 }
  0x4f   : > { %s265_s28 = scalar_select %p264_p5, %s1114_s18, 1 }
  0x50   : > { %s765_s5 = sshll.u32 %s1515_s9, 2  ;;  %282 = sbr.rel (%p767_p8) target bundleno = 87 (0x57), region = 40  ;;  %vm283_vm0 = vcmask (!%p767_p8), 7168   ;;  %v1135_v0 = vmov (!%p767_p8), -inf   ;;  %v1136_v1 = vmov (!%p767_p8), 0.0  }
  0x51   : > { %s1339_s21 = scalar_lea.vmem %s1475_s0, %s765_s5  ;;  %s766_s6 = sshll.u32 %s265_s28, 1  ;;  %284 = vst.msk [vmem:[#allocation2] sm:$0xff] (!%p767_p8), %vm283_vm0, %v1135_v0  ;;  %285 = vst.msk [vmem:[#allocation2 + $0x8] sm:$0xff] (!%p767_p8), %vm283_vm0, %v1135_v0 }
  0x52   : > { %p267_p10 = scmp.lt.s32.totalorder %s766_s6, 3  ;;  %286 = vst.msk [vmem:[#allocation3] sm:$0xff] (!%p767_p8), %vm283_vm0, %v1136_v1  ;;  %287 = vst.msk [vmem:[#allocation3 + $0x8] sm:$0xff] (!%p767_p8), %vm283_vm0, %v1136_v1 }
  0x54   : > { %s1517_s6 = smov (!%p267_p10, %s766_s6), 3 }
  0x55   : > { %s269_s15 = scalar_lea.vmem %s1477_s2, %s1517_s6 }
  0x57 PF: > { %p768_p4 = scmp.ge.s32.totalorder %s1114_s18, 2 }
  0x58   : > { %v944_v2 = vld [vmem:[%s1324_s26 + $0x40] sm:$0xff] (!%p768_p4)   ;;  %vm423_vm1 = vcmask (!%p768_p4), 261120   ;;  %v946_v4 = vld [vmem:[%s1324_s26 + $0x48] sm:$0xff] (!%p768_p4)   ;;  %v948_v8 = vld [vmem:[%s1324_s26 + $0x50] sm:$0xff] (!%p768_p4)   ;;  %v328_v27 = vlaneseq (!%p768_p4)  ;;  %s802_s28 = sshll.u32 (!%p768_p4), %s1114_s18, 5  ;;  %v1137_v44 = vmov (!%p768_p4), 0  }
  0x59   : > { %291 = sbr.rel (%p768_p4) target bundleno = 810 (0x32a), region = 44  ;;  %v945_v3 = vld [vmem:[%s1324_s26] sm:$0xff] (!%p768_p4)   ;;  %823 = vmatprep.subr.msk.bf16.mxu0 (!%p768_p4), %vm423_vm1, %v944_v2  ;;  %v947_v6 = vld [vmem:[%s1324_s26 + $0x8] sm:$0xff] (!%p768_p4)   ;;  %v949_v9 = vld [vmem:[%s1324_s26 + $0x10] sm:$0xff] (!%p768_p4)   ;;  %942 = vset.pattern.permute.xlu1 (!%p768_p4), %v1137_v44  ;;  %vm568_vm2 = vcmask (!%p768_p4), 7168  }
  0x5a   : > { %v428_v5 = vsel (!%p768_p4), %vm423_vm1, %v945_v3, 0  ;;  %v431_v7 = vsel (!%p768_p4), %vm423_vm1, %v947_v6, 0  ;;  %v960_v10 = vld [vmem:[%s1339_s21] sm:$0xff] (!%p768_p4)   ;;  %v434_v11 = vsel (!%p768_p4), %vm423_vm1, %v949_v9, 0  ;;  %v950_v12 = vld [vmem:[%s1324_s26 + $0x58] sm:$0xff] (!%p768_p4)   ;;  %v954_v18 = vld [vmem:[%s1324_s26 + $0x68] sm:$0xff] (!%p768_p4)   ;;  %943 = vset.pattern.permute.xlu0 (!%p768_p4), %v1137_v44 }
  0x5b   : > { %806 = vmatpush3.bf16.xpose.msra.mxu0 (!%p768_p4), %v428_v5  ;;  %821 = vmatprep.mubr.msk.bf16.mxu0 (!%p768_p4), %vm423_vm1, %v960_v10  ;;  %v951_v13 = vld [vmem:[%s1324_s26 + $0x18] sm:$0xff] (!%p768_p4)   ;;  %v952_v15 = vld [vmem:[%s1324_s26 + $0x60] sm:$0xff] (!%p768_p4)   ;;  %v955_v19 = vld [vmem:[%s1324_s26 + $0x28] sm:$0xff] (!%p768_p4)   ;;  %v329_v28 = vshrl.u32 (!%p768_p4), %v328_v27, 7 }
  0x5c   : > { %824 = vmatprep.subr.msk.bf16.mxu0 (!%p768_p4), %vm423_vm1, %v946_v4  ;;  %v437_v14 = vsel (!%p768_p4), %vm423_vm1, %v951_v13, 0  ;;  %v953_v16 = vld [vmem:[%s1324_s26 + $0x20] sm:$0xff] (!%p768_p4)   ;;  %v443_v20 = vsel (!%p768_p4), %vm423_vm1, %v955_v19, 0  ;;  %v956_v21 = vld [vmem:[%s1324_s26 + $0x70] sm:$0xff] (!%p768_p4)   ;;  %v958_v24 = vld [vmem:[%s1324_s26 + $0x78] sm:$0xff] (!%p768_p4)  }
  0x5d   : > { %v440_v17 = vsel (!%p768_p4), %vm423_vm1, %v953_v16, 0  ;;  %v957_v22 = vld [vmem:[%s1324_s26 + $0x30] sm:$0xff] (!%p768_p4)   ;;  %v959_v25 = vld [vmem:[%s1324_s26 + $0x38] sm:$0xff] (!%p768_p4)   ;;  %v330_v29 = vsub.s32 (!%p768_p4), 0, %v329_v28  ;;  %v326_v30 = vld [vmem:[%s269_s15] sm:$0x3] (!%p768_p4) }
  0x5e   : > { %v446_v23 = vsel (!%p768_p4), %vm423_vm1, %v957_v22, 0  ;;  %v449_v26 = vsel (!%p768_p4), %vm423_vm1, %v959_v25, 0  ;;  %v334_v31 = vsub.s32 (!%p768_p4), 1, %v329_v28  ;;  %s575_s26 = scalar_lea.vmem (!%p768_p4), [#allocation4], %s802_s28  ;;  %v518_v45 = vld [vmem:[#allocation2] sm:$0xff] (!%p768_p4)  ;;  %v519_v48 = vld [vmem:[#allocation2 + $0x8] sm:$0xff] (!%p768_p4) }
  0x5f   : > { %v331_v32 = vrot.slane (!%p768_p4), %v326_v30, %v330_v29 }
  0x60   : > { %v335_v33 = vrot.slane %v326_v30, %v334_v31 }
  0x63   : > { %808 = vmatpush3.bf16.xpose.msra.mxu0 %v431_v7 }
  0x64   : > { %825 = vmatprep.subr.msk.bf16.mxu0 %vm423_vm1, %v948_v8  ;;  %v528_v8 = vld [vmem:[#allocation3] sm:$0xff] }
  0x6b   : > { %810 = vmatpush3.bf16.xpose.msra.mxu0 %v434_v11 }
  0x6c   : > { %826 = vmatprep.subr.msk.bf16.mxu0 %vm423_vm1, %v950_v12  ;;  %v529_v12 = vld [vmem:[#allocation3 + $0x8] sm:$0xff] }
  0x73   : > { %812 = vmatpush3.bf16.xpose.msra.mxu0 %v437_v14 }
  0x74   : > { %827 = vmatprep.subr.msk.bf16.mxu0 %vm423_vm1, %v952_v15 }
  0x7b   : > { %814 = vmatpush3.bf16.xpose.msra.mxu0 %v440_v17 }
  0x7c   : > { %828 = vmatprep.subr.msk.bf16.mxu0 %vm423_vm1, %v954_v18 }
  0x83   : > { %816 = vmatpush3.bf16.xpose.msra.mxu0 %v443_v20 }
  0x84   : > { %829 = vmatprep.subr.msk.bf16.mxu0 %vm423_vm1, %v956_v21 }
  0x8b   : > { %818 = vmatpush3.bf16.xpose.msra.mxu0 %v446_v23 }
  0x8c   : > { %830 = vmatprep.subr.msk.bf16.mxu0 %vm423_vm1, %v958_v24 }
  0x93   : > { %820 = vmatpush3.bf16.xpose.msra.mxu0 %v449_v26 }
  0x9a   : > { %822 = vmatmul.mubr.msk.bf16.vlgmr.msra.gmra.mrb[0].mxu0 %vm423_vm1, %v960_v10 }
 0x16d   : > { %v509_v34 = vpop.f32.mrb[0].mxu0 }
 0x16e   : > { %v510_v35 = vadd.f32 %v509_v34, %v331_v32  ;;  %v511_v36 = vpop.f32.mrb[1].mxu0 }
 0x16f   : > { %v512_v37 = vadd.f32 %v511_v36, %v335_v33  ;;  %v513_v38 = vpop.f32.mrb[2].mxu0 }
 0x170   : > { %576 = vst [vmem:[%s575_s26] sm:$0xff] %v510_v35  ;;  %v514_v39 = vadd.f32 %v513_v38, %v331_v32  ;;  %v515_v40 = vpop.f32.mrb[3].mxu0 }
 0x171   : > { %577 = vst [vmem:[%s575_s26 + $0x8] sm:$0xff] %v512_v37  ;;  %v516_v41 = vadd.f32 %v515_v40, %v335_v33  ;;  %v520_v42 = vmax.f32 %v510_v35, %v512_v37 }
 0x172   : > { %578 = vst [vmem:[%s575_s26 + $0x10] sm:$0xff] %v514_v39 }
 0x173   : > { %579 = vst [vmem:[%s575_s26 + $0x18] sm:$0xff] %v516_v41  ;;  %521 = vmax.xlane.f32.xlu0 %v520_v42  ;;  %v523_v43 = vmax.f32 %v514_v39, %v516_v41 }
 0x177   : > { %524 = vmax.xlane.f32.xlu0 %v523_v43 }
 0x200   : > { %v522_v46 = vpop.xlane.xlu0 %521 }
 0x201   : > { %v526_v47 = vmax.f32 %v518_v45, %v522_v46 }
 0x203   : > { %v530_v49 = vsub.f32 %v518_v45, %v526_v47  ;;  %571 = vst.msk [vmem:[#allocation2] sm:$0xff] %vm568_vm2, %v526_v47  ;;  %540 = vperm.xlu1 %942, %v526_v47  }
 0x204   : > { %v525_v50 = vpop.xlane.xlu0 %524 }
 0x205   : > { %v527_v51 = vmax.f32 %v519_v48, %v525_v50  ;;  %v532_v5 = vmul.f32 1.442695, %v530_v49 }
 0x207   : > { %v531_v52 = vsub.f32 %v519_v48, %v527_v51  ;;  %572 = vst.msk [vmem:[#allocation2 + $0x8] sm:$0xff] %vm568_vm2, %v527_v51  ;;  %545 = vperm.xlu1 %942, %v527_v51  }
 0x209   : > { %v534_v6 = vmul.f32 1.442695, %v531_v52 }
 0x282   : > { %v541_v53 = vpop.permute.xlu1 %540 }
 0x283   : > { %v548_v54 = vsub.f32 %v510_v35, %v541_v53  ;;  %v549_v55 = vsub.f32 %v512_v37, %v541_v53 }
 0x285   : > { %v552_v56 = vmul.f32 1.442695, %v548_v54  ;;  %v554_v57 = vmul.f32 1.442695, %v549_v55 }
 0x286   : > { %v546_v58 = vpop.permute.xlu1 %545 }
 0x287   : > { %961 = vpow2.f32 %v552_v56  ;;  %v550_v59 = vsub.f32 %v514_v39, %v546_v58  ;;  %v551_v60 = vsub.f32 %v516_v41, %v546_v58 }
 0x288   : > { %963 = vpow2.f32 %v554_v57 }
 0x289   : > { %v556_v61 = vmul.f32 1.442695, %v550_v59  ;;  %v558_v62 = vmul.f32 1.442695, %v551_v60 }
 0x28b   : > { %965 = vpow2.f32 %v556_v61 }
 0x28c   : > { %967 = vpow2.f32 %v558_v62 }
 0x28d   : > { %969 = vpow2.f32 %v532_v5 }
 0x28e   : > { %971 = vpow2.f32 %v534_v6 }
 0x291   : > { %v962_v63 = vpop.eup %961 }
 0x292   : > { %v964_v0 = vpop.eup %963 }
 0x293   : > { %v560_v1 = vadd.f32 %v964_v0, %v962_v63 }
 0x295   : > { %v966_v2 = vpop.eup %965  ;;  %561 = vadd.xlane.f32.xlu0 %v560_v1 }
 0x296   : > { %v968_v3 = vpop.eup %967 }
 0x297   : > { %v563_v4 = vadd.f32 %v968_v3, %v966_v2  ;;  %v970_v7 = vpop.eup %969 }
 0x298   : > { %v536_v9 = vmul.f32 %v970_v7, %v528_v8  ;;  %v972_v10 = vpop.eup %971 }
 0x299   : > { %564 = vadd.xlane.f32.xlu1 %v563_v4  ;;  %v537_v14 = vmul.f32 %v972_v10, %v529_v12 }
 0x322   : > { %v562_v11 = vpop.xlane.xlu0 %561 }
 0x323   : > { %v566_v13 = vadd.f32 %v562_v11, %v536_v9 }
 0x325   : > { %569 = vst.msk [vmem:[#allocation3] sm:$0xff] %vm568_vm2, %v566_v13 }
 0x326   : > { %v565_v15 = vpop.xlane.xlu1 %564 }
 0x327   : > { %v567_v16 = vadd.f32 %v565_v15, %v537_v14 }
 0x329   : > { %570 = vst.msk [vmem:[#allocation3 + $0x8] sm:$0xff] %vm568_vm2, %v567_v16 }
 0x32a PF: > { %p789_p6 = scmp.lt.s32.totalorder %s1114_s18, 2 }
 0x32b   : > { %v1138_v18 = vmov (!%p789_p6), 0   ;;  %v584_v21 = vld [vmem:[#allocation2] sm:$0xff] (!%p789_p6)  ;;  %v585_v24 = vld [vmem:[#allocation2 + $0x8] sm:$0xff] (!%p789_p6)  ;;  %s790_s5 = sadd.s32 (!%p789_p6), 4294967294, %s1114_s18 }
 0x32c   : > { %583 = sbr.rel (%p789_p6) target bundleno = 963 (0x3c3), region = 48  ;;  %v586_v17 = vld [vmem:[#allocation3] sm:$0xff] (!%p789_p6)  ;;  %973 = vset.pattern.permute.xlu0 (!%p789_p6), %v1138_v18  ;;  %s803_s7 = sshll.u32 (!%p789_p6), %s790_s5, 5 }
 0x32d   : > { %974 = vlog2.f32 (!%p789_p6), %v586_v17  ;;  %s597_s25 = scalar_lea.vmem (!%p789_p6), [#allocation4], %s803_s7 }
 0x32e   : > { %v598_v28 = vld [vmem:[%s597_s25] sm:$0xff] (!%p789_p6)  ;;  %v599_v29 = vld [vmem:[%s597_s25 + $0x8] sm:$0xff] (!%p789_p6)  ;;  %v600_v33 = vld [vmem:[%s597_s25 + $0x10] sm:$0xff] (!%p789_p6) }
 0x32f   : > { %v601_v34 = vld [vmem:[%s597_s25 + $0x18] sm:$0xff] (!%p789_p6) }
 0x330   : > { %v587_v19 = vld [vmem:[#allocation3 + $0x8] sm:$0xff] (!%p789_p6) }
 0x331   : > { %976 = vlog2.f32 (!%p789_p6), %v587_v19 }
 0x337   : > { %v975_v20 = vpop.eup %974 }
 0x338   : > { %v589_v23 = vmul.f32 0.6931472, %v975_v20 }
 0x33a   : > { %v592_v26 = vadd.f32 %v589_v23, %v584_v21 }
 0x33b   : > { %v977_v22 = vpop.eup %976 }
 0x33c   : > { %v591_v25 = vmul.f32 0.6931472, %v977_v22  ;;  %604 = vperm.xlu0 %973, %v592_v26  }
 0x33e   : > { %v593_v27 = vadd.f32 %v591_v25, %v585_v24 }
 0x340   : > { %609 = vperm.xlu0 %973, %v593_v27  }
 0x3bb   : > { %v605_v30 = vpop.permute.xlu0 %604 }
 0x3bc   : > { %v612_v31 = vsub.f32 %v598_v28, %v605_v30  ;;  %v613_v32 = vsub.f32 %v599_v29, %v605_v30 }
 0x3be   : > { %616 = vst [vmem:[%s1347_s23] sm:$0xff] %v612_v31  ;;  %617 = vst [vmem:[%s1347_s23 + $0x8] sm:$0xff] %v613_v32 }
 0x3bf   : > { %v610_v35 = vpop.permute.xlu0 %609 }
 0x3c0   : > { %v614_v36 = vsub.f32 %v600_v33, %v610_v35  ;;  %v615_v37 = vsub.f32 %v601_v34, %v610_v35 }
 0x3c2   : > { %618 = vst [vmem:[%s1347_s23 + $0x10] sm:$0xff] %v614_v36  ;;  %619 = vst [vmem:[%s1347_s23 + $0x18] sm:$0xff] %v615_v37 }
 0x3c3 PF: > { %s794_s21 = sadd.s32 4294967294, %s1114_s18  ;;  %s804_s6 = sshll.u32 %s1118_s19, 3 }
 0x3c4   : > { %p629_p9 = scmp.gt.s32.totalorder %s794_s21, 0  ;;  %s640_s30 = sshll.u32 %s1347_s23, 4  ;;  %s1405_s30 = int_to_ptr.vmem [resolvable:$true] %s640_s30 }
 0x3c5   : > { %s1414_s5 = scalar_lea.sflag [#allocation7], %s252_s24  ;;  %s1008_s18 = scalar_lea.vmem %s1405_s30, 512 }
 0x3c6   : > { %s1519_s21 = smov (!%p629_p9, %s794_s21), 0  ;;  %p1009_p12 = scmp.ne.s32.totalorder %s1405_s30, %s1008_s18 }
 0x3c7   : > { %s796_s10 = sshll.u32 %s1519_s21, 1  ;;  %p1491_p7 = scmp.ne.s32.totalorder %s1488_s27, 0 }
 0x3c8   : > { %s637_s15 = sadd.s32 %s804_s6, %s796_s10  ;;  %s1139_s19 = smov [#allocation8]  }
 0x3c9   : > { %s798_s9 = sshll.u32 %s637_s15, 7  ;;  %p1010_p0 = pnand %p1009_p12, %p1491_p7 }
 0x3ca   : > { %s1410_s26 = scalar_lea.hbm %s1478_s3, %s798_s9  ;;  %s1012_s23 = sshll.u32 %s1139_s19, 4  ;;  %s1013_s23 = int_to_ptr.vmem [resolvable:$false] %s1012_s23 }
 0x3cb   : > { %p1011_p1 = pneg %p1010_p0  ;;  %s1014_s7 = scalar_lea.vmem %s1013_s23, 1024 }
 0x3cc   : > { %p1015_p11 = scmp.lt.s32.totalorder %s1405_s30, %s1013_s23  ;;  %p1016_p13 = scmp.lt.s32.totalorder %s1014_s7, %s1008_s18 }
 0x3ce   : > { %p1017_p2 = por %p1016_p13, %p1015_p11 }
 0x3d0   : > { %p1018_p3 = pnand %p1017_p2, %p1011_p1 }
 0x3d2   : > { %1021 = shalt.err (!%p1018_p3)
}
 0x3d3   : > { %s1022_s24 = scalar_lea.hbm %s1410_s26, 512  ;;  %s1026_s6 = scalar_lea.hbm %s1478_s3, 2048 }
 0x3d4   : > { %p1023_p5 = scmp.ne.s32.totalorder %s1410_s26, %s1022_s24  ;;  %p1027_p4 = scmp.lt.u32.totalorder %s1410_s26, %s1478_s3 }
 0x3d5   : > { %p1028_p6 = scmp.lt.u32.totalorder %s1026_s6, %s1022_s24  ;;  %p1030_p12 = scmp.lt.u32.totalorder %s1022_s24, %s1410_s26 }
 0x3d6   : > { %p1024_p10 = pnand %p1023_p5, %p1491_p7 }
 0x3d7   : > { %p1029_p9 = por %p1028_p6, %p1027_p4 }
 0x3d8   : > { %p1025_p8 = pneg %p1024_p10 }
 0x3d9   : > { %p1031_p0 = por %p1030_p12, %p1029_p9 }
 0x3db   : > { %p1032_p1 = pnand %p1031_p0, %p1025_p8 }
 0x3dd   : > { %1035 = shalt.err (!%p1032_p1)
}
 0x3de   : > { %s1140_s9 = smov 256   ;;  %s1141_s11 = smov 512  }
 0x3df   : > { %s1142_s28 = smov 16  }
 0x3e0   : > { %833 = dma.vmem_to_hbm [thread:$0]  (%p1491_p7), %s1405_s30, 512, %s1410_s26, %s1414_s5, %s1140_s9, %s1141_s11, %s1142_s28  }
 0x3e1 PF: > { %p844_p11 = scmp.ge.s32.totalorder %s1130_s22, 2  ;;  %s655_s18 = sand.u32 1, %s1090_s12  }
 0x3e2   : > { %p1492_p13 = scmp.ne.s32.totalorder %s1489_s29, 0  ;;  %s656_s19 = scalar_lea.sflag [#allocation7], %s655_s18 }
 0x3e4   : > { %p840_p2 = pnand %p844_p11, %p1492_p13 }
 0x3e6   : > { %1085 = dma.done.wait (!%p840_p2), %s656_s19, 512  }
 0x3e7   : > { %1087 = vsyncadd (!%p840_p2), %s656_s19, 4294966784  ;;  %s19_s22 = sadd.s32 1, %s1130_s22   ;;  %s1493_s19 = sld [smem:[#allocation11_spill]] }
 0x3e8   : > { %p16_p3 = scmp.ge.s32.totalorder %s19_s22, 10   ;;  %s1494_s27 = sld [smem:[#allocation12_spill]] }
 0x3e9   : > { %s1495_s21 = sld [smem:[#allocation13_spill]]  ;;  %s1496_s12 = smov %s1094_s13 }
 0x3ea   : > { %s1497_s13 = smov %s1098_s14  ;;  %s1498_s14 = smov %s1276_s4 }
 0x3eb   : > { %s1499_s15 = smov %s1106_s16  ;;  %s1500_s16 = smov %s1110_s17 }
 0x3ec   : > { %s1501_s17 = smov %s1253_s8  ;;  %s1502_s18 = smov %s1122_s20 }
 0x3ed   :  { %18 = sbr.rel (!%p16_p3) target bundleno = 9 (0x9), region = 97 }
 0x3ee   : > { %s1503_s20 = smov %s1494_s27 }
 0x3f4   :  { %661 = vsyncpa [#allocation6], 1 }
 0x3f5   :  { %663 = vsyncpa [#allocation6 + $0x1], 1 }
 0x3f6   :  { %664 = vsyncpa [#allocation7], 1 }
 0x3f7   :  { %666 = vsyncpa [#allocation7 + $0x1], 1 }

</bundles_post_ra>
